<compile_context>
chip_gen: v7x
topology: tpu7x:2x2x1
jax: 0.10.0
libtpu: 0.0.40
codegen_flags: <defaults>
</compile_context>

<pallas_src>
import jax
import jax.numpy as jnp
from jax.experimental import pallas as pl
from jax.experimental.pallas import tpu as pltpu

LANE = 128  # lane width
SUB = 8     # f32 sublane count


def _round_up(x, m):
    return ((x + m - 1) // m) * m


def mlp_kernel(x_ref, w1_ref, b1_ref, w2_ref, b2_ref, w3_ref, b3_ref, o_ref):
    # Fc1 + ReLU
    h = jnp.dot(x_ref[...], w1_ref[...], preferred_element_type=jnp.float32)
    h = jnp.maximum(h + b1_ref[...], 0.0)
    # Fc2 + ReLU
    h = jnp.dot(h, w2_ref[...], preferred_element_type=jnp.float32)
    h = jnp.maximum(h + b2_ref[...], 0.0)
    # Fc3 (no activation)
    out = jnp.dot(h, w3_ref[...], preferred_element_type=jnp.float32)
    out = out + b3_ref[...]
    o_ref[...] = out.astype(o_ref.dtype)


def prep_params(w1, b1, w2, b2, w3, b3, *, pad_output_lanes=True):
    """One-time parameter prep (call at init, NOT per forward / per timestep).

    Casts params to f32, reshapes biases to (1, n), and -- if
    pad_output_lanes -- zero-pads the final layer's out_features up to a
    128-lane multiple so the kernel's single HBM store is lane-dense.
    Padding is numerically inert (zero weight cols, zero bias) and is sliced
    off in the wrapper.
    """
    f32 = jnp.float32
    as2d = lambda b: jnp.asarray(b, f32).reshape(1, -1)
    w1 = jnp.asarray(w1, f32)
    w2 = jnp.asarray(w2, f32)
    w3 = jnp.asarray(w3, f32)
    b1, b2, b3 = as2d(b1), as2d(b2), as2d(b3)

    out_dim = w3.shape[1]
    if pad_output_lanes and out_dim % LANE != 0:
        out_p = _round_up(out_dim, LANE)
        w3 = jnp.pad(w3, ((0, 0), (0, out_p - out_dim)))
        b3 = jnp.pad(b3, ((0, 0), (0, out_p - out_dim)))

    return (w1, b1, w2, b2, w3, b3), out_dim


def gru_linear_forward(x, params, out_dim, *, block_batch=256):
    """Fused 3-layer MLP forward (one pallas_call).

    `params` must come from prep_params. For B <= block_batch the whole batch
    is one grid step; otherwise the batch is tiled in block_batch-row tiles on
    a 'parallel' grid axis with the weights held resident in VMEM.
    """
    w1, b1, w2, b2, w3, b3 = params
    B, in_dim = x.shape
    h1 = w1.shape[1]
    h2 = w2.shape[1]
    out_p = w3.shape[1]  # possibly lane-padded out_features

    x = x.astype(jnp.float32)

    if B <= block_batch:
        # Single full-extent batch block: no batch padding, grid=(1,).
        tb = B
        B_pad = B
    else:
        tb = _round_up(block_batch, SUB)
        B_pad = _round_up(B, tb)
        if B_pad != B:
            x = jnp.pad(x, ((0, B_pad - B), (0, 0)))
    grid_b = B_pad // tb

    # Weights/biases: constant block index across the batch grid axis
    # -> loaded into VMEM once and kept resident for every batch tile.
    const = lambda shape: pl.BlockSpec(shape, lambda i: (0, 0))

    # Cost estimate from true (unpadded) dims.
    flops = 2 * B * (in_dim * h1 + h1 * h2 + h2 * out_dim)
    bytes_accessed = 4 * (B * in_dim + w1.size + b1.size + w2.size + b2.size
                          + w3.size + b3.size + B * out_dim)

    out = pl.pallas_call(
        mlp_kernel,
        out_shape=jax.ShapeDtypeStruct((B_pad, out_p), x.dtype),
        grid=(grid_b,),
        in_specs=[
            pl.BlockSpec((tb, in_dim), lambda i: (i, 0)),   # x: advances with i
            const(w1.shape), const(b1.shape),               # Fc1
            const(w2.shape), const(b2.shape),               # Fc2
            const(w3.shape), const(b3.shape),               # Fc3
        ],
        out_specs=pl.BlockSpec((tb, out_p), lambda i: (i, 0)),
        compiler_params=pltpu.CompilerParams(
            dimension_semantics=("parallel",)),
        cost_estimate=pl.CostEstimate(flops=flops,
                                      bytes_accessed=bytes_accessed,
                                      transcendentals=0),
    )(x, w1, b1, w2, b2, w3, b3)

    if B_pad != B or out_p != out_dim:
        out = out[:B, :out_dim]
    return out


def reference_forward(x, w1, b1, w2, b2, w3, b3):
    h = jnp.maximum(x @ w1 + b1, 0.0)
    h = jnp.maximum(h @ w2 + b2, 0.0)
    return h @ w3 + b3


if __name__ == "__main__":
    # Shapes implied by the module: x_mix is (batch, input_size).
    batch, input_size, h1, h2, output_size = 16, 32, 64, 32, 16

    key = jax.random.PRNGKey(0)
    kx, k1, k2, k3, kb1, kb2, kb3, kx2 = jax.random.split(key, 8)

    # Deterministic parameter init (uniform, like torch's default Linear init),
    # stored pre-transposed as (in_features, out_features); biases 1-D.
    def init_linear(kw, kb, fan_in, fan_out):
        bound = 1.0 / jnp.sqrt(fan_in)
        w = jax.random.uniform(kw, (fan_in, fan_out), jnp.float32, -bound, bound)
        b = jax.random.uniform(kb, (fan_out,), jnp.float32, -bound, bound)
        return w, b

    w1, b1 = init_linear(k1, kb1, input_size, h1)
    w2, b2 = init_linear(k2, kb2, h1, h2)
    w3, b3 = init_linear(k3, kb3, h2, output_size)

    # Case 1: tiny batch -> single grid step, lane-dense padded output.
    params_small, out_dim = prep_params(w1, b1, w2, b2, w3, b3,
                                        pad_output_lanes=True)
    x = jax.random.normal(kx, (batch, input_size), dtype=jnp.float32)
    out = jax.block_until_ready(gru_linear_forward(x, params_small, out_dim))
    ref = reference_forward(x, w1, b1, w2, b2, w3, b3)
    assert out.shape == (batch, output_size)
    assert jnp.allclose(out, ref, atol=1e-5, rtol=1e-5), "mismatch (small batch)"

    # Case 2: larger batch -> 2-step 'parallel' grid (weights resident),
    # unpadded (true out_dim) output path.
    params_big, out_dim_b = prep_params(w1, b1, w2, b2, w3, b3,
                                        pad_output_lanes=False)
    big_batch = 512
    x_big = jax.random.normal(kx2, (big_batch, input_size), dtype=jnp.float32)
    out_big = jax.block_until_ready(
        gru_linear_forward(x_big, params_big, out_dim_b, block_batch=256))
    ref_big = reference_forward(x_big, w1, b1, w2, b2, w3, b3)
    assert out_big.shape == (big_batch, output_size)
    assert jnp.allclose(out_big, ref_big, atol=1e-5, rtol=1e-5), \
        "mismatch (large batch)"

    print("KERNEL_OK")
</pallas_src>

<mosaic_0001>
module attributes {stable_mosaic.version = 11 : i64} {
  func.func @mlp_kernel(%arg0: i32, %arg1: memref<16x32xf32, #tpu.memory_space<vmem>>, %arg2: memref<32x64xf32, #tpu.memory_space<vmem>>, %arg3: memref<1x64xf32, #tpu.memory_space<vmem>>, %arg4: memref<64x32xf32, #tpu.memory_space<vmem>>, %arg5: memref<1x32xf32, #tpu.memory_space<vmem>>, %arg6: memref<32x128xf32, #tpu.memory_space<vmem>>, %arg7: memref<1x128xf32, #tpu.memory_space<vmem>>, %arg8: memref<16x128xf32, #tpu.memory_space<vmem>>) attributes {dimension_semantics = [#tpu.dimension_semantics<parallel>], iteration_bounds = array<i64: 1>, scalar_prefetch = 0 : i64, scratch_operands = 0 : i64, tpu.core_type = #tpu.core_type<tc>, window_params = [{transform_indices = @transform_0, window_bounds = array<i64: 16, 32>}, {pipeline_mode = #tpu.pipeline_mode<synchronous>, transform_indices = @transform_1, window_bounds = array<i64: 32, 64>}, {pipeline_mode = #tpu.pipeline_mode<synchronous>, transform_indices = @transform_2, window_bounds = array<i64: 1, 64>}, {pipeline_mode = #tpu.pipeline_mode<synchronous>, transform_indices = @transform_3, window_bounds = array<i64: 64, 32>}, {pipeline_mode = #tpu.pipeline_mode<synchronous>, transform_indices = @transform_4, window_bounds = array<i64: 1, 32>}, {pipeline_mode = #tpu.pipeline_mode<synchronous>, transform_indices = @transform_5, window_bounds = array<i64: 32, 128>}, {pipeline_mode = #tpu.pipeline_mode<synchronous>, transform_indices = @transform_6, window_bounds = array<i64: 1, 128>}, {transform_indices = @transform_7, window_bounds = array<i64: 16, 128>}]} {
    %c0 = arith.constant 0 : index
    %c0_0 = arith.constant 0 : index
    %0 = vector.load %arg1[%c0, %c0_0] : memref<16x32xf32, #tpu.memory_space<vmem>>, vector<16x32xf32>
    %c0_1 = arith.constant 0 : index
    %c0_2 = arith.constant 0 : index
    %1 = vector.load %arg2[%c0_1, %c0_2] : memref<32x64xf32, #tpu.memory_space<vmem>>, vector<32x64xf32>
    %cst = arith.constant dense<0.000000e+00> : vector<16x64xf32>
    %2 = tpu.matmul %0, %1, %cst {dimension_numbers = #tpu.dot_dimension_numbers<[1], [0], [0], [1], [0, 0, 1, 1], [], []>} : vector<16x32xf32>, vector<32x64xf32>, vector<16x64xf32> -> vector<16x64xf32>
    %c0_3 = arith.constant 0 : index
    %c0_4 = arith.constant 0 : index
    %3 = vector.load %arg3[%c0_3, %c0_4] : memref<1x64xf32, #tpu.memory_space<vmem>>, vector<1x64xf32>
    %4 = vector.broadcast %3 : vector<1x64xf32> to vector<16x64xf32>
    %5 = arith.addf %2, %4 : vector<16x64xf32>
    %cst_5 = arith.constant 0.000000e+00 : f32
    %6 = vector.broadcast %cst_5 : f32 to vector<16x64xf32>
    %7 = arith.maximumf %5, %6 : vector<16x64xf32>
    %c0_6 = arith.constant 0 : index
    %c0_7 = arith.constant 0 : index
    %8 = vector.load %arg4[%c0_6, %c0_7] : memref<64x32xf32, #tpu.memory_space<vmem>>, vector<64x32xf32>
    %cst_8 = arith.constant dense<0.000000e+00> : vector<16x32xf32>
    %9 = tpu.matmul %7, %8, %cst_8 {dimension_numbers = #tpu.dot_dimension_numbers<[1], [0], [0], [1], [0, 0, 1, 1], [], []>} : vector<16x64xf32>, vector<64x32xf32>, vector<16x32xf32> -> vector<16x32xf32>
    %c0_9 = arith.constant 0 : index
    %c0_10 = arith.constant 0 : index
    %10 = vector.load %arg5[%c0_9, %c0_10] : memref<1x32xf32, #tpu.memory_space<vmem>>, vector<1x32xf32>
    %11 = vector.broadcast %10 : vector<1x32xf32> to vector<16x32xf32>
    %12 = arith.addf %9, %11 : vector<16x32xf32>
    %cst_11 = arith.constant 0.000000e+00 : f32
    %13 = vector.broadcast %cst_11 : f32 to vector<16x32xf32>
    %14 = arith.maximumf %12, %13 : vector<16x32xf32>
    %c0_12 = arith.constant 0 : index
    %c0_13 = arith.constant 0 : index
    %15 = vector.load %arg6[%c0_12, %c0_13] : memref<32x128xf32, #tpu.memory_space<vmem>>, vector<32x128xf32>
    %cst_14 = arith.constant dense<0.000000e+00> : vector<16x128xf32>
    %16 = tpu.matmul %14, %15, %cst_14 {dimension_numbers = #tpu.dot_dimension_numbers<[1], [0], [0], [1], [0, 0, 1, 1], [], []>} : vector<16x32xf32>, vector<32x128xf32>, vector<16x128xf32> -> vector<16x128xf32>
    %c0_15 = arith.constant 0 : index
    %c0_16 = arith.constant 0 : index
    %17 = vector.load %arg7[%c0_15, %c0_16] : memref<1x128xf32, #tpu.memory_space<vmem>>, vector<1x128xf32>
    %18 = vector.broadcast %17 : vector<1x128xf32> to vector<16x128xf32>
    %19 = arith.addf %16, %18 : vector<16x128xf32>
    %c0_17 = arith.constant 0 : index
    %c0_18 = arith.constant 0 : index
    %20 = vector.load %arg8[%c0_17, %c0_18] : memref<16x128xf32, #tpu.memory_space<vmem>>, vector<16x128xf32>
    tpu.vector_store %arg8[%c0_17, %c0_18], %19 {strides = array<i32>} : memref<16x128xf32, #tpu.memory_space<vmem>>, vector<16x128xf32>,
    return
  }
  func.func @transform_0(%arg0: i32) -> (i32, i32) {
    %c0_i32 = arith.constant 0 : i32
    %c0_i32_0 = arith.constant 0 : i32
    return %arg0, %c0_i32 : i32, i32
  }
  func.func @transform_1(%arg0: i32) -> (i32, i32) {
    %c0_i32 = arith.constant 0 : i32
    %c0_i32_0 = arith.constant 0 : i32
    %c0_i32_1 = arith.constant 0 : i32
    return %c0_i32, %c0_i32_0 : i32, i32
  }
  func.func @transform_2(%arg0: i32) -> (i32, i32) {
    %c0_i32 = arith.constant 0 : i32
    %c0_i32_0 = arith.constant 0 : i32
    %c0_i32_1 = arith.constant 0 : i32
    return %c0_i32, %c0_i32_0 : i32, i32
  }
  func.func @transform_3(%arg0: i32) -> (i32, i32) {
    %c0_i32 = arith.constant 0 : i32
    %c0_i32_0 = arith.constant 0 : i32
    %c0_i32_1 = arith.constant 0 : i32
    return %c0_i32, %c0_i32_0 : i32, i32
  }
  func.func @transform_4(%arg0: i32) -> (i32, i32) {
    %c0_i32 = arith.constant 0 : i32
    %c0_i32_0 = arith.constant 0 : i32
    %c0_i32_1 = arith.constant 0 : i32
    return %c0_i32, %c0_i32_0 : i32, i32
  }
  func.func @transform_5(%arg0: i32) -> (i32, i32) {
    %c0_i32 = arith.constant 0 : i32
    %c0_i32_0 = arith.constant 0 : i32
    %c0_i32_1 = arith.constant 0 : i32
    return %c0_i32, %c0_i32_0 : i32, i32
  }
  func.func @transform_6(%arg0: i32) -> (i32, i32) {
    %c0_i32 = arith.constant 0 : i32
    %c0_i32_0 = arith.constant 0 : i32
    %c0_i32_1 = arith.constant 0 : i32
    return %c0_i32, %c0_i32_0 : i32, i32
  }
  func.func @transform_7(%arg0: i32) -> (i32, i32) {
    %c0_i32 = arith.constant 0 : i32
    %c0_i32_0 = arith.constant 0 : i32
    return %arg0, %c0_i32 : i32, i32
  }
}

</mosaic_0001>

<bundles_post_ra>
// kernel: tpu_custom_call.1
= control target key start
LH: loop header
LB: loop body
LE: loop exit
PB: predicated region body
PF: predicated region fallthrough
CT: control target
= control target key end

     0   :  { %vm40_vm0 = vcmask 261120   ;;  %s586_s0 = inlined_call_operand.vmem [shape: f32[16,32], index: 0, kind: input, shape index: {}]   ;;  %s587_s1 = inlined_call_operand.vmem [shape: f32[32,64], index: 1, kind: input, shape index: {}]   ;;  %s588_s2 = inlined_call_operand.vmem [shape: f32[1,64], index: 2, kind: input, shape index: {}]   ;;  %s589_s3 = inlined_call_operand.vmem [shape: f32[64,32], index: 3, kind: input, shape index: {}]   ;;  %s590_s4 = inlined_call_operand.vmem [shape: f32[1,32], index: 4, kind: input, shape index: {}]   ;;  %s591_s5 = inlined_call_operand.vmem [shape: f32[32,128], index: 5, kind: input, shape index: {}]   ;;  %s592_s6 = inlined_call_operand.vmem [shape: f32[1,128], index: 6, kind: input, shape index: {}]   ;;  %s593_s7 = inlined_call_operand.hbm [shape: f32[16,128], index: 7, kind: output, shape index: {}]  }
   0x1   :  { %v29_v0 = vld [vmem:[%s587_s1] sm:$0xff]  ;;  %v30_v1 = vld [vmem:[%s587_s1 + $0x8] sm:$0xff]  ;;  %v31_v2 = vld [vmem:[%s587_s1 + $0x10] sm:$0xff] }
   0x2   :  { %v405_v3 = vpack.c.bf16 %v30_v1, %v29_v0  ;;  %v32_v4 = vld [vmem:[%s587_s1 + $0x18] sm:$0xff]  ;;  %v27_v5 = vld [vmem:[%s586_s0] sm:$0xff]  ;;  %v125_v8 = vld [vmem:[%s589_s3 + $0x8] sm:$0xff] }
   0x3   :  { %v409_v6 = vpack.c.bf16 %v32_v4, %v31_v2  ;;  %372 = vmatprep.mubr.msk.f32.mxu0 %vm40_vm0, %v27_v5  ;;  %v124_v7 = vld [vmem:[%s589_s3] sm:$0xff]  ;;  %v126_v9 = vld [vmem:[%s589_s3 + $0x10] sm:$0xff]  ;;  %v127_v11 = vld [vmem:[%s589_s3 + $0x18] sm:$0xff] }
   0x4   :  { %406 = vmatprep.subr.bf16.mxu0 %v405_v3  ;;  %v413_v10 = vpack.c.bf16 %v125_v8, %v124_v7  ;;  %v417_v12 = vpack.c.bf16 %v127_v11, %v126_v9  ;;  %v128_v13 = vld [vmem:[%s589_s3 + $0x20] sm:$0xff]  ;;  %v129_v14 = vld [vmem:[%s589_s3 + $0x28] sm:$0xff] }
   0x5   :  { %408 = vmatpush3.bf16.msra.mxu0 %v405_v3 }
   0x6   :  { %12 = vsyncpa [#allocation3], 0  ;;  %410 = vmatprep.subr.bf16.mxu0 %v409_v6  ;;  %414 = vmatprep.subr.bf16.mxu1 %v413_v10  ;;  %v421_v15 = vpack.c.bf16 %v129_v14, %v128_v13  ;;  %v28_v16 = vld [vmem:[%s586_s0 + $0x8] sm:$0xff]  ;;  %v130_v17 = vld [vmem:[%s589_s3 + $0x30] sm:$0xff]  ;;  %vm139_vm1 = vcmask 523264  }
   0x7   :  { %416 = vmatpush3.bf16.msra.mxu1 %v413_v10  ;;  %v131_v18 = vld [vmem:[%s589_s3 + $0x38] sm:$0xff]  ;;  %v223_v20 = vld [vmem:[%s591_s5] sm:$0xff]  ;;  %v224_v21 = vld [vmem:[%s591_s5 + $0x8] sm:$0xff] }
   0x8   :  { %418 = vmatprep.subr.bf16.mxu1 %v417_v12  ;;  %v425_v19 = vpack.c.bf16 %v131_v18, %v130_v17  ;;  %v429_v22 = vpack.c.bf16 %v224_v21, %v223_v20  ;;  %v333_v23 = vld [vmem:[%s588_s2] ss:$0 sm:$0xff]  ;;  %v225_v30 = vld [vmem:[%s591_s5 + $0x10] sm:$0xff]  ;;  %v226_v31 = vld [vmem:[%s591_s5 + $0x18] sm:$0xff]  ;;  %s464_s5 = smov [#allocation2]  }
   0x9   :  { %412 = vmatpush3.bf16.msra.mxu0 %v409_v6  ;;  %v433_v32 = vpack.c.bf16 %v226_v31, %v225_v30  ;;  %v336_v33 = vld [vmem:[%s590_s4] ss:$0 sm:$0xff]  ;;  %s322_s16 = sshll.u32 %s464_s5, 4  ;;  %s323_s16 = int_to_ptr.vmem [resolvable:$true] %s322_s16 }
   0xa   :  { %430 = vmatprep.subr.bf16.mxu0 %v429_v22  ;;  %v339_v40 = vld [vmem:[%s592_s6] ss:$0 sm:$0xff]  ;;  %s440_s4 = scalar_lea.vmem %s323_s16, 256  ;;  %p445_p1 = scmp.lt.s32.totalorder %s323_s16, %s323_s16 }
   0xb   :  { %420 = vmatpush3.bf16.msra.mxu1 %v417_v12  ;;  %p441_p0 = scmp.ne.s32.totalorder %s323_s16, %s440_s4  ;;  %p446_p2 = scmp.lt.s32.totalorder %s440_s4, %s440_s4 }
   0xc   :  { %373 = vmatmul.mubr.msk.f32.vlgmr.msra.gmra.mrb[0].mxu0 %vm40_vm0, %v28_v16  ;;  %422 = vmatprep.subr.bf16.mxu1 %v421_v15 }
   0xd   :  { %432 = vmatpush3.bf16.msra.mxu0 %v429_v22  ;;  %p447_p3 = por %p446_p2, %p445_p1 }
   0xe   :  { %434 = vmatprep.subr.bf16.mxu0 %v433_v32 }
   0xf   :  { %424 = vmatpush3.bf16.msra.mxu1 %v421_v15  ;;  %p448_p4 = pnand %p447_p3, %p441_p0 }
  0x10   :  { %426 = vmatprep.subr.bf16.mxu1 %v425_v19 }
  0x11   :  { %436 = vmatpush3.bf16.msra.mxu0 %v433_v32 }
  0x13   :  { %428 = vmatpush3.bf16.msra.mxu1 %v425_v19 }
  0xdf   :  { %v374_v24 = vpop.f32.mrb[0].mxu0 }
  0xe0   :  { %v119_v25 = vadd.f32 %v374_v24, %v333_v23  ;;  %v113_v26 = vpop.f32.mrb[1].mxu0 }
  0xe1   :  { %v114_v27 = vadd.f32 %v333_v23, %v113_v26 }
  0xe2   :  { %v123_v29 = vmax.f32 %v119_v25, 0.0 }
  0xe3   :  { %v122_v28 = vmax.f32 %v114_v27, 0.0 }
  0xe5   :  { %391 = vmatprep.mubr.msk.f32.mxu1 %vm139_vm1, %v122_v28 }
  0xe6   :  { %392 = vmatmul.mubr.msk.f32.vlgmr.msra.gmra.mrb[0].mxu1 %vm139_vm1, %v123_v29 }
 0x1b9   :  { %v393_v34 = vpop.f32.mrb[0].mxu1 }
 0x1ba   :  { %v218_v35 = vadd.f32 %v393_v34, %v336_v33  ;;  %v212_v36 = vpop.f32.mrb[1].mxu1 }
 0x1bb   :  { %v213_v37 = vadd.f32 %v336_v33, %v212_v36 }
 0x1bc   :  { %v222_v39 = vmax.f32 %v218_v35, 0.0 }
 0x1bd   :  { %v221_v38 = vmax.f32 %v213_v37, 0.0 }
 0x1bf   :  { %402 = vmatprep.mubr.msk.f32.mxu0 %vm40_vm0, %v221_v38 }
 0x1c0   :  { %403 = vmatmul.mubr.msk.f32.vlgmr.msra.gmra.mrb[2].mxu0 %vm40_vm0, %v222_v39 }
 0x293   :  { %v404_v41 = vpop.f32.mrb[2].mxu0 }
 0x294   :  { %v312_v42 = vadd.f32 %v404_v41, %v339_v40  ;;  %v306_v43 = vpop.f32.mrb[3].mxu0 }
 0x295   :  { %v307_v44 = vadd.f32 %v339_v40, %v306_v43 }
 0x296   :  { %316 = vst [vmem:[#allocation2 + $0x8] sm:$0xff] %v312_v42 }
 0x297   :  { %315 = vst [vmem:[#allocation2] sm:$0xff] %v307_v44 }
 0x298   :  { %451 = shalt.err (!%p448_p4)
}
 0x299   :  { %s452_s6 = scalar_lea.hbm %s593_s7, 256 }
 0x29a   :  { %p453_p5 = scmp.ne.s32.totalorder %s593_s7, %s452_s6  ;;  %p456_p6 = scmp.lt.u32.totalorder %s452_s6, %s593_s7 }
 0x29c   :  { %p458_p7 = pnand %p456_p6, %p453_p5 }
 0x29e   :  { %461 = shalt.err (!%p458_p7)
}
 0x29f   :  { %s465_s22 = smov 128   ;;  %s466_s23 = smov 8  }
 0x2a0   :  { %328 = dma.vmem_to_hbm [thread:$0]  %s323_s16, 256, %s593_s7, [#allocation3], %s465_s22, %s465_s22, %s466_s23  }
 0x2a1   :  { %462 = dma.done.wait [#allocation3], 256  }
 0x2a2   :  { %463 = vsyncadd [#allocation3], 4294967040 }
 0x2a3   :  { %332 = vsyncpa [#allocation3], 1 }

</bundles_post_ra>
